<compile_context>
chip_gen: v7x
topology: tpu7x:2x2x1
jax: 0.10.0
libtpu: 0.0.40
codegen_flags: <defaults>
</compile_context>

<pallas_src>
import jax
import jax.numpy as jnp
from jax.experimental import pallas as pl
from jax.experimental.pallas import tpu as pltpu

_LANES = 128
_SUBLANES = 8


def _pmlp_loss_kernel(mu_pred_ref, logvar_pred_ref, mu_ref, var_ref, out_ref):
    """One grid step: (tile_rows, 128) block per input -> (1, 8, 128) partial sum."""
    mu_pred = mu_pred_ref[...].astype(jnp.float32)
    logvar_pred = logvar_pred_ref[...].astype(jnp.float32)
    mu = mu_ref[...].astype(jnp.float32)
    var = var_ref[...].astype(jnp.float32)

    diff = mu - mu_pred
    term = ((diff * diff + jnp.exp(logvar_pred)) / var
            + jnp.log(var) - logvar_pred - 1.0) * 0.5

    # Fold (tile_rows, 128) -> (8, 128) with vreg-aligned VPU adds; the full
    # cross-lane reduce happens once in the wrapper, not per grid step.
    partial = jnp.sum(term.reshape(-1, _SUBLANES, _LANES), axis=0)
    out_ref[...] = partial[None]


def pmlp_loss(mu_pred, logvar_pred, mu, var, *, tile_rows=2048):
    """Pallas implementation of BasePMLP.loss (returns a scalar f32).

    Accepts any floating dtype (e.g. bf16 inputs halve HBM traffic); math is
    done in f32 inside the kernel.
    """
    assert mu_pred.shape == logvar_pred.shape == mu.shape == var.shape
    n = 1
    for d in mu_pred.shape:
        n *= d
    assert n > 0

    # Round tile_rows up to a sublane multiple, clamp for small problems.
    tile_rows = max(_SUBLANES, (int(tile_rows) + _SUBLANES - 1) // _SUBLANES * _SUBLANES)
    rows_needed = (n + _LANES - 1) // _LANES
    rows_needed = (rows_needed + _SUBLANES - 1) // _SUBLANES * _SUBLANES
    tile_rows = min(tile_rows, rows_needed)

    chunk = tile_rows * _LANES
    num_blocks = (n + chunk - 1) // chunk
    n_pad = num_blocks * chunk
    total_rows = num_blocks * tile_rows

    # Padding values chosen so padded elements contribute exactly 0 to the sum:
    #   ((0 - 0)^2 + exp(0)) / 1 + log(1) - 0 - 1 = 0
    pad_vals = (0.0, 0.0, 0.0, 1.0)  # (mu_pred, logvar_pred, mu, var)
    slabs = []
    for x, pv in zip((mu_pred, logvar_pred, mu, var), pad_vals):
        xf = x.reshape(-1)
        if n_pad != n:
            xf = jnp.pad(xf, (0, n_pad - n), constant_values=pv)
        slabs.append(xf.reshape(total_rows, _LANES))

    in_spec = pl.BlockSpec((tile_rows, _LANES), lambda i: (i, 0))
    out_spec = pl.BlockSpec((1, _SUBLANES, _LANES), lambda i: (i, 0, 0))

    partials = pl.pallas_call(
        _pmlp_loss_kernel,
        out_shape=jax.ShapeDtypeStruct((num_blocks, _SUBLANES, _LANES), jnp.float32),
        grid_spec=pltpu.PrefetchScalarGridSpec(
            num_scalar_prefetch=0,
            grid=(num_blocks,),
            in_specs=[in_spec, in_spec, in_spec, in_spec],
            out_specs=out_spec,
        ),
        compiler_params=pltpu.CompilerParams(
            dimension_semantics=("parallel",),   # independent partial sums -> both TCs on v7x
            vmem_limit_bytes=32 * 1024 * 1024,   # 4 inputs x 2 bufs x 1 MiB fits on all gens
        ),
    )(*slabs)

    return jnp.sum(partials) / jnp.float32(n)


def pmlp_loss_ref(mu_pred, logvar_pred, mu, var):
    """Pure-JAX reference (mirrors the PyTorch loss exactly)."""
    return jnp.mean(
        (((mu - mu_pred) ** 2 + jnp.exp(logvar_pred)) / var
         + jnp.log(var) - logvar_pred - 1.0) / 2.0)


if __name__ == "__main__":
    key = jax.random.PRNGKey(0)

    # Small shape matching the module's (batch, features) layout.
    B, D = 32, 128
    k1, k2, k3, k4, key = jax.random.split(key, 5)
    mu_pred = jax.random.normal(k1, (B, D), dtype=jnp.float32)
    logvar_pred = 0.1 * jax.random.normal(k2, (B, D), dtype=jnp.float32)
    mu = jax.random.normal(k3, (B, D), dtype=jnp.float32)
    var = jax.nn.softplus(jax.random.normal(k4, (B, D), dtype=jnp.float32)) + 0.1

    loss = jax.block_until_ready(pmlp_loss(mu_pred, logvar_pred, mu, var))
    loss_ref = jax.block_until_ready(pmlp_loss_ref(mu_pred, logvar_pred, mu, var))
    assert jnp.allclose(loss, loss_ref, rtol=1e-5, atol=1e-5), (loss, loss_ref)

    # Ragged shape (exercises the zero-contribution padding path, no asserts).
    B2, D2 = 37, 50
    k1, k2, k3, k4, key = jax.random.split(key, 5)
    mu_pred2 = jax.random.normal(k1, (B2, D2), dtype=jnp.float32)
    logvar_pred2 = 0.1 * jax.random.normal(k2, (B2, D2), dtype=jnp.float32)
    mu2 = jax.random.normal(k3, (B2, D2), dtype=jnp.float32)
    var2 = jax.nn.softplus(jax.random.normal(k4, (B2, D2), dtype=jnp.float32)) + 0.1

    loss2 = jax.block_until_ready(pmlp_loss(mu_pred2, logvar_pred2, mu2, var2))
    loss2_ref = jax.block_until_ready(pmlp_loss_ref(mu_pred2, logvar_pred2, mu2, var2))
    assert jnp.allclose(loss2, loss2_ref, rtol=1e-5, atol=1e-5), (loss2, loss2_ref)

    print("KERNEL_OK")
</pallas_src>

<mosaic_0001>
module attributes {stable_mosaic.version = 11 : i64} {
  func.func @_pmlp_loss_kernel(%arg0: i32, %arg1: memref<32x128xf32, #tpu.memory_space<vmem>>, %arg2: memref<32x128xf32, #tpu.memory_space<vmem>>, %arg3: memref<32x128xf32, #tpu.memory_space<vmem>>, %arg4: memref<32x128xf32, #tpu.memory_space<vmem>>, %arg5: memref<1x8x128xf32, #tpu.memory_space<vmem>>) attributes {dimension_semantics = [#tpu.dimension_semantics<parallel>], iteration_bounds = array<i64: 1>, scalar_prefetch = 0 : i64, scratch_operands = 0 : i64, tpu.core_type = #tpu.core_type<tc>, window_params = [{transform_indices = @transform_0, window_bounds = array<i64: 32, 128>}, {transform_indices = @transform_1, window_bounds = array<i64: 32, 128>}, {transform_indices = @transform_2, window_bounds = array<i64: 32, 128>}, {transform_indices = @transform_3, window_bounds = array<i64: 32, 128>}, {transform_indices = @transform_4, window_bounds = array<i64: 1, 8, 128>}]} {
    %c0 = arith.constant 0 : index
    %c0_0 = arith.constant 0 : index
    %0 = vector.load %arg1[%c0, %c0_0] : memref<32x128xf32, #tpu.memory_space<vmem>>, vector<32x128xf32>
    %c0_1 = arith.constant 0 : index
    %c0_2 = arith.constant 0 : index
    %1 = vector.load %arg2[%c0_1, %c0_2] : memref<32x128xf32, #tpu.memory_space<vmem>>, vector<32x128xf32>
    %c0_3 = arith.constant 0 : index
    %c0_4 = arith.constant 0 : index
    %2 = vector.load %arg3[%c0_3, %c0_4] : memref<32x128xf32, #tpu.memory_space<vmem>>, vector<32x128xf32>
    %c0_5 = arith.constant 0 : index
    %c0_6 = arith.constant 0 : index
    %3 = vector.load %arg4[%c0_5, %c0_6] : memref<32x128xf32, #tpu.memory_space<vmem>>, vector<32x128xf32>
    %4 = arith.subf %2, %0 : vector<32x128xf32>
    %5 = arith.mulf %4, %4 : vector<32x128xf32>
    %6 = math.exp %1 : vector<32x128xf32>
    %7 = arith.addf %5, %6 : vector<32x128xf32>
    %8 = arith.divf %7, %3 : vector<32x128xf32>
    %9 = math.log %3 : vector<32x128xf32>
    %10 = arith.addf %8, %9 : vector<32x128xf32>
    %11 = arith.subf %10, %1 : vector<32x128xf32>
    %cst = arith.constant 1.000000e+00 : f32
    %12 = vector.broadcast %cst : f32 to vector<32x128xf32>
    %13 = arith.subf %11, %12 : vector<32x128xf32>
    %cst_7 = arith.constant 5.000000e-01 : f32
    %14 = vector.broadcast %cst_7 : f32 to vector<32x128xf32>
    %15 = arith.mulf %13, %14 : vector<32x128xf32>
    %16 = vector.shape_cast %15 : vector<32x128xf32> to vector<4x8x128xf32>
    %cst_8 = arith.constant dense<0.000000e+00> : vector<8x128xf32>
    %17 = vector.multi_reduction <add>, %16, %cst_8 [0] : vector<4x8x128xf32> to vector<8x128xf32>
    %18 = vector.shape_cast %17 : vector<8x128xf32> to vector<1x8x128xf32>
    %c0_9 = arith.constant 0 : index
    %c0_10 = arith.constant 0 : index
    %c0_11 = arith.constant 0 : index
    %19 = vector.load %arg5[%c0_9, %c0_10, %c0_11] : memref<1x8x128xf32, #tpu.memory_space<vmem>>, vector<1x8x128xf32>
    tpu.vector_store %arg5[%c0_9, %c0_10, %c0_11], %18 {strides = array<i32>} : memref<1x8x128xf32, #tpu.memory_space<vmem>>, vector<1x8x128xf32>,
    return
  }
  func.func @transform_0(%arg0: i32) -> (i32, i32) {
    %c0_i32 = arith.constant 0 : i32
    %c0_i32_0 = arith.constant 0 : i32
    return %arg0, %c0_i32 : i32, i32
  }
  func.func @transform_1(%arg0: i32) -> (i32, i32) {
    %c0_i32 = arith.constant 0 : i32
    %c0_i32_0 = arith.constant 0 : i32
    return %arg0, %c0_i32 : i32, i32
  }
  func.func @transform_2(%arg0: i32) -> (i32, i32) {
    %c0_i32 = arith.constant 0 : i32
    %c0_i32_0 = arith.constant 0 : i32
    return %arg0, %c0_i32 : i32, i32
  }
  func.func @transform_3(%arg0: i32) -> (i32, i32) {
    %c0_i32 = arith.constant 0 : i32
    %c0_i32_0 = arith.constant 0 : i32
    return %arg0, %c0_i32 : i32, i32
  }
  func.func @transform_4(%arg0: i32) -> (i32, i32, i32) {
    %c0_i32 = arith.constant 0 : i32
    %c0_i32_0 = arith.constant 0 : i32
    %c0_i32_1 = arith.constant 0 : i32
    return %arg0, %c0_i32, %c0_i32_0 : i32, i32, i32
  }
}

</mosaic_0001>

<bundles_post_ra>
// kernel: tpu_custom_call.1
= control target key start
LH: loop header
LB: loop body
LE: loop exit
PB: predicated region body
PF: predicated region fallthrough
CT: control target
= control target key end

     0   :  { %9 = vsyncpa [#allocation3], 0  ;;  %s449_s0 = inlined_call_operand.hbm [shape: f32[32,128], index: 0, kind: input, shape index: {}]   ;;  %s450_s1 = inlined_call_operand.hbm [shape: f32[32,128], index: 1, kind: input, shape index: {}]   ;;  %s451_s2 = inlined_call_operand.hbm [shape: f32[32,128], index: 2, kind: input, shape index: {}]   ;;  %s452_s3 = inlined_call_operand.hbm [shape: f32[32,128], index: 3, kind: input, shape index: {}]   ;;  %s453_s4 = inlined_call_operand.hbm [shape: f32[1,8,128], index: 4, kind: output, shape index: {}]  }
   0x1   :  { %10 = vsyncpa [#allocation6], 0 }
   0x2   :  { %11 = vsyncpa [#allocation9], 0 }
   0x3   :  { %12 = vsyncpa [#allocation4], 0  ;;  %s315_s15 = smov [#allocation5]   ;;  %s316_s17 = smov [#allocation2]  }
   0x4   :  { %s30_s16 = sshll.u32 %s315_s15, 4  ;;  %s18_s18 = sshll.u32 %s316_s17, 4  ;;  %s31_s16 = int_to_ptr.vmem [resolvable:$true] %s30_s16  ;;  %s347_s18 = int_to_ptr.vmem [resolvable:$true] %s18_s18 }
   0x5   :  { %s197_s21 = scalar_lea.hbm %s450_s1, 512 }
   0x6   :  { %p198_p0 = scmp.ne.s32.totalorder %s450_s1, %s197_s21  ;;  %p201_p1 = scmp.lt.u32.totalorder %s197_s21, %s450_s1 }
   0x8   :  { %p203_p2 = pnand %p201_p1, %p198_p0 }
   0xa   :  { %206 = shalt.err (!%p203_p2)
}
   0xb   :  { %s207_s26 = scalar_lea.vmem %s31_s16, 512  ;;  %p212_p4 = scmp.lt.s32.totalorder %s31_s16, %s31_s16 }
   0xc   :  { %p208_p3 = scmp.ne.s32.totalorder %s31_s16, %s207_s26  ;;  %p213_p5 = scmp.lt.s32.totalorder %s207_s26, %s207_s26 }
   0xe   :  { %p214_p6 = por %p213_p5, %p212_p4 }
  0x10   :  { %p215_p7 = pnand %p214_p6, %p208_p3 }
  0x12   :  { %218 = shalt.err (!%p215_p7)
}
  0x13   :  { %s317_s27 = smov 128   ;;  %s318_s28 = smov 8  }
  0x14   :  { %36 = dma.hbm_to_vmem [thread:$0]  %s450_s1, 512, %s31_s16, [#allocation6], %s317_s27, %s317_s27, %s318_s28  }
  0x15   :  { %s219_s7 = scalar_lea.hbm %s449_s0, 512 }
  0x16   :  { %p220_p8 = scmp.ne.s32.totalorder %s449_s0, %s219_s7  ;;  %p223_p9 = scmp.lt.u32.totalorder %s219_s7, %s449_s0 }
  0x18   :  { %p225_p10 = pnand %p223_p9, %p220_p8 }
  0x1a   :  { %228 = shalt.err (!%p225_p10)
}
  0x1b   :  { %s229_s12 = scalar_lea.vmem %s347_s18, 512  ;;  %p234_p12 = scmp.lt.s32.totalorder %s347_s18, %s347_s18 }
  0x1c   :  { %p230_p11 = scmp.ne.s32.totalorder %s347_s18, %s229_s12  ;;  %p235_p13 = scmp.lt.s32.totalorder %s229_s12, %s229_s12 }
  0x1e   :  { %p236_p0 = por %p235_p13, %p234_p12 }
  0x20   :  { %p237_p1 = pnand %p236_p0, %p230_p11 }
  0x22   :  { %240 = shalt.err (!%p237_p1)
}
  0x23   :  { %24 = dma.hbm_to_vmem [thread:$0]  %s449_s0, 512, %s347_s18, [#allocation3], %s317_s27, %s317_s27, %s318_s28  }
  0x24   :  { %s319_s14 = smov [#allocation7]   ;;  %s320_s16 = smov [#allocation8]  }
  0x25   :  { %s42_s15 = sshll.u32 %s319_s14, 4  ;;  %s54_s17 = sshll.u32 %s320_s16, 4  ;;  %s43_s15 = int_to_ptr.vmem [resolvable:$true] %s42_s15  ;;  %s384_s17 = int_to_ptr.vmem [resolvable:$true] %s54_s17 }
  0x26   :  { %s241_s21 = scalar_lea.hbm %s451_s2, 512 }
  0x27   :  { %p242_p2 = scmp.ne.s32.totalorder %s451_s2, %s241_s21  ;;  %p245_p3 = scmp.lt.u32.totalorder %s241_s21, %s451_s2 }
  0x29   :  { %p247_p4 = pnand %p245_p3, %p242_p2 }
  0x2b   :  { %250 = shalt.err (!%p247_p4)
}
  0x2c   :  { %s251_s0 = scalar_lea.vmem %s43_s15, 512  ;;  %p256_p6 = scmp.lt.s32.totalorder %s43_s15, %s43_s15 }
  0x2d   :  { %p252_p5 = scmp.ne.s32.totalorder %s43_s15, %s251_s0  ;;  %p257_p7 = scmp.lt.s32.totalorder %s251_s0, %s251_s0 }
  0x2f   :  { %p258_p8 = por %p257_p7, %p256_p6 }
  0x31   :  { %p259_p9 = pnand %p258_p8, %p252_p5 }
  0x33   :  { %262 = shalt.err (!%p259_p9)
}
  0x34   :  { %48 = dma.hbm_to_vmem [thread:$0]  %s451_s2, 512, %s43_s15, [#allocation6], %s317_s27, %s317_s27, %s318_s28  }
  0x35   :  { %s263_s5 = scalar_lea.hbm %s452_s3, 512 }
  0x36   :  { %p264_p10 = scmp.ne.s32.totalorder %s452_s3, %s263_s5  ;;  %p267_p11 = scmp.lt.u32.totalorder %s263_s5, %s452_s3 }
  0x38   :  { %p269_p12 = pnand %p267_p11, %p264_p10 }
  0x3a   :  { %272 = shalt.err (!%p269_p12)
}
  0x3b   :  { %s273_s10 = scalar_lea.vmem %s384_s17, 512  ;;  %p278_p0 = scmp.lt.s32.totalorder %s384_s17, %s384_s17 }
  0x3c   :  { %p274_p13 = scmp.ne.s32.totalorder %s384_s17, %s273_s10  ;;  %p279_p1 = scmp.lt.s32.totalorder %s273_s10, %s273_s10 }
  0x3e   :  { %p280_p2 = por %p279_p1, %p278_p0 }
  0x40   :  { %p281_p3 = pnand %p280_p2, %p274_p13 }
  0x42   :  { %284 = shalt.err (!%p281_p3)
}
  0x43   :  { %60 = dma.hbm_to_vmem [thread:$0]  %s452_s3, 512, %s384_s17, [#allocation9], %s317_s27, %s317_s27, %s318_s28  }
  0x44   :  { %307 = dma.done.wait [#allocation3], 512  }
  0x45   :  { %308 = vsyncadd [#allocation3], 4294966784 }
  0x46   :  { %309 = dma.done.wait [#allocation6], 1024  }
  0x47   :  { %310 = vsyncadd [#allocation6], 4294966272 }
  0x48   :  { %311 = dma.done.wait [#allocation9], 512  }
  0x49   :  { %312 = vsyncadd [#allocation9], 4294966784  ;;  %v421_v0 = vld [vmem:[#allocation5] sm:$0xff]  ;;  %v423_v1 = vld [vmem:[#allocation5 + $0x8] sm:$0xff]  ;;  %s321_s3 = smov [#allocation10]  }
  0x4a   :  { %v425_v2 = vld [vmem:[#allocation5 + $0x10] sm:$0xff]  ;;  %v427_v3 = vld [vmem:[#allocation5 + $0x18] sm:$0xff]  ;;  %v97_v4 = vmul.f32 1.442695, %v421_v0  ;;  %v99_v5 = vmul.f32 1.442695, %v423_v1 }
  0x4b   :  { %v85_v6 = vld [vmem:[#allocation8] sm:$0xff]  ;;  %v101_v7 = vmul.f32 1.442695, %v425_v2  ;;  %v103_v8 = vmul.f32 1.442695, %v427_v3  ;;  %v86_v11 = vld [vmem:[#allocation8 + $0x8] sm:$0xff] }
  0x4c   :  { %173 = vpow2.f32 %v97_v4  ;;  %v73_v9 = vld [vmem:[#allocation2] sm:$0xff]  ;;  %v74_v12 = vld [vmem:[#allocation2 + $0x8] sm:$0xff]  ;;  %v87_v14 = vld [vmem:[#allocation8 + $0x10] sm:$0xff]  ;;  %s151_s27 = sshll.u32 %s321_s3, 4  ;;  %s152_s27 = int_to_ptr.vmem [resolvable:$true] %s151_s27 }
  0x4d   :  { %175 = vpow2.f32 %v99_v5  ;;  %v81_v10 = vld [vmem:[#allocation7] sm:$0xff]  ;;  %v82_v13 = vld [vmem:[#allocation7 + $0x8] sm:$0xff]  ;;  %v75_v15 = vld [vmem:[#allocation2 + $0x10] sm:$0xff]  ;;  %s285_s28 = scalar_lea.vmem %s152_s27, 128  ;;  %p290_p5 = scmp.lt.s32.totalorder %s152_s27, %s152_s27 }
  0x4e   :  { %177 = vrcp.f32 %v85_v6  ;;  %v83_v16 = vld [vmem:[#allocation7 + $0x10] sm:$0xff]  ;;  %v88_v17 = vld [vmem:[#allocation8 + $0x18] sm:$0xff]  ;;  %v89_v20 = vsub.f32 %v81_v10, %v73_v9  ;;  %v90_v21 = vsub.f32 %v82_v13, %v74_v12  ;;  %p286_p4 = scmp.ne.s32.totalorder %s152_s27, %s285_s28  ;;  %p291_p6 = scmp.lt.s32.totalorder %s285_s28, %s285_s28 }
  0x4f   :  { %179 = vpow2.f32 %v101_v7  ;;  %v76_v18 = vld [vmem:[#allocation2 + $0x18] sm:$0xff]  ;;  %v91_v22 = vsub.f32 %v83_v16, %v75_v15 }
  0x50   :  { %181 = vpow2.f32 %v103_v8  ;;  %v84_v19 = vld [vmem:[#allocation7 + $0x18] sm:$0xff]  ;;  %v93_v24 = vmul.f32 %v89_v20, %v89_v20  ;;  %v94_v26 = vmul.f32 %v90_v21, %v90_v21  ;;  %p292_p7 = por %p291_p6, %p290_p5 }
  0x51   :  { %183 = vrcp.f32 %v86_v11  ;;  %v92_v23 = vsub.f32 %v84_v19, %v76_v18  ;;  %v95_v28 = vmul.f32 %v91_v22, %v91_v22 }
  0x52   :  { %185 = vrcp.f32 %v87_v14  ;;  %p293_p8 = pnand %p292_p7, %p286_p4 }
  0x53   :  { %187 = vrcp.f32 %v88_v17  ;;  %v96_v30 = vmul.f32 %v92_v23, %v92_v23 }
  0x54   :  { %189 = vlog2.f32 %v85_v6 }
  0x55   :  { %191 = vlog2.f32 %v86_v11 }
  0x56   :  { %v174_v25 = vpop.eup %173  ;;  %193 = vlog2.f32 %v87_v14 }
  0x57   :  { %v176_v27 = vpop.eup %175  ;;  %195 = vlog2.f32 %v88_v17  ;;  %v105_v32 = vadd.f32 %v174_v25, %v93_v24 }
  0x58   :  { %v178_v29 = vpop.eup %177  ;;  %v106_v34 = vadd.f32 %v176_v27, %v94_v26 }
  0x59   :  { %v180_v31 = vpop.eup %179  ;;  %v110_v40 = vmul.f32 %v178_v29, %v105_v32 }
  0x5a   :  { %v182_v33 = vpop.eup %181  ;;  %v107_v36 = vadd.f32 %v180_v31, %v95_v28 }
  0x5b   :  { %v184_v35 = vpop.eup %183  ;;  %v108_v38 = vadd.f32 %v182_v33, %v96_v30 }
  0x5c   :  { %v186_v37 = vpop.eup %185  ;;  %v112_v42 = vmul.f32 %v184_v35, %v106_v34 }
  0x5d   :  { %v188_v39 = vpop.eup %187  ;;  %v114_v44 = vmul.f32 %v186_v37, %v107_v36 }
  0x5e   :  { %v190_v41 = vpop.eup %189  ;;  %v116_v47 = vmul.f32 %v188_v39, %v108_v38 }
  0x5f   :  { %v192_v43 = vpop.eup %191  ;;  %v118_v45 = vmul.f32 0.6931472, %v190_v41 }
  0x60   :  { %v194_v46 = vpop.eup %193  ;;  %v120_v48 = vmul.f32 0.6931472, %v192_v43 }
  0x61   :  { %v196_v49 = vpop.eup %195  ;;  %v122_v50 = vmul.f32 0.6931472, %v194_v46  ;;  %v125_v51 = vadd.f32 %v118_v45, %v110_v40 }
  0x62   :  { %v124_v52 = vmul.f32 0.6931472, %v196_v49  ;;  %v126_v53 = vadd.f32 %v120_v48, %v112_v42 }
  0x63   :  { %v127_v54 = vadd.f32 %v122_v50, %v114_v44  ;;  %v129_v55 = vsub.f32 %v125_v51, %v421_v0 }
  0x64   :  { %v128_v56 = vadd.f32 %v124_v52, %v116_v47  ;;  %v130_v57 = vsub.f32 %v126_v53, %v423_v1 }
  0x65   :  { %v131_v58 = vsub.f32 %v127_v54, %v425_v2  ;;  %v162_v59 = vadd.f32 -1.0, %v129_v55 }
  0x66   :  { %v132_v60 = vsub.f32 %v128_v56, %v427_v3  ;;  %v163_v61 = vadd.f32 -1.0, %v130_v57 }
  0x67   :  { %v164_v62 = vadd.f32 -1.0, %v131_v58  ;;  %v137_v63 = vmul.f32 0.5, %v162_v59 }
  0x68   :  { %v165_v4 = vadd.f32 -1.0, %v132_v60  ;;  %v138_v5 = vmul.f32 0.5, %v163_v61 }
  0x69   :  { %v139_v6 = vmul.f32 0.5, %v164_v62 }
  0x6a   :  { %v140_v7 = vmul.f32 0.5, %v165_v4  ;;  %v141_v8 = vadd.f32 %v138_v5, %v137_v63 }
  0x6c   :  { %v142_v9 = vadd.f32 %v141_v8, %v139_v6 }
  0x6e   :  { %v143_v0 = vadd.f32 %v142_v9, %v140_v7 }
  0x70   :  { %144 = vst [vmem:[#allocation10] sm:$0xff] %v143_v0 }
  0x71   :  { %296 = shalt.err (!%p293_p8)
}
  0x72   :  { %s297_s13 = scalar_lea.hbm %s453_s4, 128 }
  0x73   :  { %p298_p9 = scmp.ne.s32.totalorder %s453_s4, %s297_s13  ;;  %p301_p10 = scmp.lt.u32.totalorder %s297_s13, %s453_s4 }
  0x75   :  { %p303_p11 = pnand %p301_p10, %p298_p9 }
  0x77   :  { %306 = shalt.err (!%p303_p11)
}
  0x78   :  { %154 = dma.vmem_to_hbm [thread:$0]  %s152_s27, 128, %s453_s4, [#allocation4]  }
  0x79   :  { %313 = dma.done.wait [#allocation4], 128  }
  0x7a   :  { %314 = vsyncadd [#allocation4], 4294967168 }
  0x7b   :  { %158 = vsyncpa [#allocation3], 1 }
  0x7c   :  { %159 = vsyncpa [#allocation6], 1 }
  0x7d   :  { %160 = vsyncpa [#allocation9], 1 }
  0x7e   :  { %161 = vsyncpa [#allocation4], 1 }

</bundles_post_ra>
